<compile_context>
chip_gen: v7x
topology: tpu7x:2x2x1
jax: 0.10.0
libtpu: 0.0.40
codegen_flags: <defaults>
</compile_context>

<pallas_src>
from functools import partial

import jax
import jax.numpy as jnp
from jax.experimental import pallas as pl
from jax.experimental.pallas import tpu as pltpu

LANE = 128  # TPU vreg lane width


def _round_up(n, m):
    return ((n + m - 1) // m) * m


def _mlp_kernel(x_ref, w1_ref, b1_ref, w2_ref, b2_ref, w3_ref, b3_ref, o_ref):
    # x_ref: (in, TB) bf16 ; w*: (out, in) bf16 ; b*: (out, 1) f32 ; o_ref: (4, TB) bf16
    x = x_ref[...]
    h1 = jnp.dot(w1_ref[...], x, preferred_element_type=jnp.float32) + b1_ref[...]
    h1 = jnp.maximum(h1, 0.0)                                    # ReLU (f32 on VPU)
    h2 = jnp.dot(w2_ref[...], h1.astype(jnp.bfloat16),
                 preferred_element_type=jnp.float32) + b2_ref[...]
    h2 = jnp.maximum(h2, 0.0)                                    # ReLU
    y = jnp.dot(w3_ref[...], h2.astype(jnp.bfloat16),
                preferred_element_type=jnp.float32) + b3_ref[...]
    o_ref[...] = y.astype(o_ref.dtype)                           # bf16 writeback


def _choose_tiling(batch, tile_b):
    """Pick (tile, n_steps, padded_batch). Batch padded only to 128 lanes; tile (nearly)
    divides the padded batch; >=2 grid steps when the batch allows (v7x dual-TC)."""
    b128 = _round_up(max(batch, 1), LANE)
    tb_cap = max(LANE, _round_up(min(tile_b, b128), LANE))   # guard: multiple of 128
    n_steps = (b128 + tb_cap - 1) // tb_cap
    if n_steps == 1 and b128 >= 2 * LANE:
        n_steps = 2                                          # let both v7x TCs work
    tb = _round_up((b128 + n_steps - 1) // n_steps, LANE)
    n_steps = (b128 + tb - 1) // tb
    return tb, n_steps, n_steps * tb


@partial(jax.jit, static_argnames=("tile_b",))
def performance_predictor(x, params, tile_b=32768):
    """x: (B, input_size) float32. params: w* of shape (out, in), b* of shape (out, 1).
    Returns (B, 4) float32 (matches torch's Linear: y = x @ W.T + b)."""
    w1, b1, w2, b2, w3, b3 = (params[k] for k in ("w1", "b1", "w2", "b2", "w3", "b3"))
    B, in_size = x.shape
    hid = w1.shape[0]
    out_size = w3.shape[0]

    tb, n_steps, b_pad = _choose_tiling(B, tile_b)
    grid = (n_steps,)

    # Feature-major, bf16 input stream (batch on lanes). Under jit this transpose/cast/pad
    # fuses into one pass; ideally the producer would already emit (in_size, B) bf16.
    x_t = x.T.astype(jnp.bfloat16)
    if b_pad != B:
        x_t = jnp.pad(x_t, ((0, 0), (0, b_pad - B)))

    y_t = pl.pallas_call(
        _mlp_kernel,
        out_shape=jax.ShapeDtypeStruct((out_size, b_pad), jnp.bfloat16),
        grid_spec=pltpu.PrefetchScalarGridSpec(
            num_scalar_prefetch=0,
            grid=grid,
            in_specs=[
                pl.BlockSpec((in_size, tb), lambda i: (0, i)),     # x tile (streamed)
                pl.BlockSpec((hid, in_size), lambda i: (0, 0)),    # w1 (VMEM-resident)
                pl.BlockSpec((hid, 1), lambda i: (0, 0)),          # b1
                pl.BlockSpec((hid, hid), lambda i: (0, 0)),        # w2
                pl.BlockSpec((hid, 1), lambda i: (0, 0)),          # b2
                pl.BlockSpec((out_size, hid), lambda i: (0, 0)),   # w3
                pl.BlockSpec((out_size, 1), lambda i: (0, 0)),     # b3
            ],
            out_specs=pl.BlockSpec((out_size, tb), lambda i: (0, i)),
        ),
        compiler_params=pltpu.CompilerParams(
            dimension_semantics=("parallel",),                     # shards over v7x's 2 TCs
            vmem_limit_bytes=48 * 1024 * 1024,                     # big tiles, safe on 64MiB v7x
        ),
    )(x_t,
      w1.astype(jnp.bfloat16), b1,
      w2.astype(jnp.bfloat16), b2,
      w3.astype(jnp.bfloat16), b3)

    # Slice off padded lanes, back to (B, 4) f32; fuses with the kernel output copy under jit.
    return y_t[:, :B].T.astype(jnp.float32)


def init_params(key, input_size=8, hidden_size=32, out_size=4):
    """Torch nn.Linear-style init (uniform +/- 1/sqrt(fan_in)); weights stored (out, in)."""
    ks = jax.random.split(key, 6)

    def lin(kw, kb, fan_in, fan_out):
        bound = 1.0 / jnp.sqrt(jnp.float32(fan_in))
        w = jax.random.uniform(kw, (fan_out, fan_in), jnp.float32, -bound, bound)
        b = jax.random.uniform(kb, (fan_out, 1), jnp.float32, -bound, bound)
        return w, b

    w1, b1 = lin(ks[0], ks[1], input_size, hidden_size)
    w2, b2 = lin(ks[2], ks[3], hidden_size, hidden_size)
    w3, b3 = lin(ks[4], ks[5], hidden_size, out_size)
    return {"w1": w1, "b1": b1, "w2": w2, "b2": b2, "w3": w3, "b3": b3}


def _ref_forward(x, params):
    # Plain-JAX f32 reference (torch semantics: y = x @ W.T + b).
    h = jnp.maximum(x @ params["w1"].T + params["b1"].T, 0.0)
    h = jnp.maximum(h @ params["w2"].T + params["b2"].T, 0.0)
    return h @ params["w3"].T + params["b3"].T


if __name__ == "__main__":
    key = jax.random.PRNGKey(0)
    k_param, k_x1, k_x2 = jax.random.split(key, 3)

    input_size, hidden_size, out_size = 8, 32, 4
    params = init_params(k_param, input_size, hidden_size, out_size)

    # Small batch consistent with the module (exercises lane padding: 2 -> 128, grid=(1,)).
    x = jax.random.normal(k_x1, (2, input_size), jnp.float32)
    out = jax.block_until_ready(performance_predictor(x, params))
    ref = _ref_forward(x, params)
    assert out.shape == (2, out_size)
    # bf16 matmul operands + bf16 output -> loosened tolerance vs the f32 reference.
    assert jnp.allclose(out, ref, atol=3e-2, rtol=3e-2)

    # Second check exercising the multi-step batch grid + adaptive tiling/padding
    # (B=300 -> padded to 384 lanes -> 2 steps of 256 lanes).
    x_big = jax.random.normal(k_x2, (300, input_size), jnp.float32)
    out_big = jax.block_until_ready(performance_predictor(x_big, params))
    ref_big = _ref_forward(x_big, params)
    assert out_big.shape == (300, out_size)
    assert jnp.allclose(out_big, ref_big, atol=3e-2, rtol=3e-2)

    print("KERNEL_OK")
</pallas_src>

<mosaic_0001>
module attributes {stable_mosaic.version = 11 : i64} {
  func.func @_mlp_kernel(%arg0: i32, %arg1: memref<8x128xbf16, #tpu.memory_space<vmem>>, %arg2: memref<32x8xbf16, #tpu.memory_space<vmem>>, %arg3: memref<32x1xf32, #tpu.memory_space<vmem>>, %arg4: memref<32x32xbf16, #tpu.memory_space<vmem>>, %arg5: memref<32x1xf32, #tpu.memory_space<vmem>>, %arg6: memref<4x32xbf16, #tpu.memory_space<vmem>>, %arg7: memref<4x1xf32, #tpu.memory_space<vmem>>, %arg8: memref<4x128xbf16, #tpu.memory_space<vmem>>) attributes {dimension_semantics = [#tpu.dimension_semantics<parallel>], iteration_bounds = array<i64: 1>, scalar_prefetch = 0 : i64, scratch_operands = 0 : i64, tpu.core_type = #tpu.core_type<tc>, window_params = [{transform_indices = @transform_0, window_bounds = array<i64: 8, 128>}, {pipeline_mode = #tpu.pipeline_mode<synchronous>, transform_indices = @transform_1, window_bounds = array<i64: 32, 8>}, {pipeline_mode = #tpu.pipeline_mode<synchronous>, transform_indices = @transform_2, window_bounds = array<i64: 32, 1>}, {pipeline_mode = #tpu.pipeline_mode<synchronous>, transform_indices = @transform_3, window_bounds = array<i64: 32, 32>}, {pipeline_mode = #tpu.pipeline_mode<synchronous>, transform_indices = @transform_4, window_bounds = array<i64: 32, 1>}, {pipeline_mode = #tpu.pipeline_mode<synchronous>, transform_indices = @transform_5, window_bounds = array<i64: 4, 32>}, {pipeline_mode = #tpu.pipeline_mode<synchronous>, transform_indices = @transform_6, window_bounds = array<i64: 4, 1>}, {transform_indices = @transform_7, window_bounds = array<i64: 4, 128>}]} {
    %c0 = arith.constant 0 : index
    %c0_0 = arith.constant 0 : index
    %0 = vector.load %arg1[%c0, %c0_0] : memref<8x128xbf16, #tpu.memory_space<vmem>>, vector<8x128xbf16>
    %c0_1 = arith.constant 0 : index
    %c0_2 = arith.constant 0 : index
    %1 = vector.load %arg2[%c0_1, %c0_2] : memref<32x8xbf16, #tpu.memory_space<vmem>>, vector<32x8xbf16>
    %cst = arith.constant dense<0.000000e+00> : vector<32x128xf32>
    %2 = tpu.matmul %1, %0, %cst {dimension_numbers = #tpu.dot_dimension_numbers<[1], [0], [0], [1], [0, 0, 1, 1], [], []>} : vector<32x8xbf16>, vector<8x128xbf16>, vector<32x128xf32> -> vector<32x128xf32>
    %c0_3 = arith.constant 0 : index
    %c0_4 = arith.constant 0 : index
    %3 = vector.load %arg3[%c0_3, %c0_4] : memref<32x1xf32, #tpu.memory_space<vmem>>, vector<32x1xf32>
    %4 = vector.broadcast %3 : vector<32x1xf32> to vector<32x128xf32>
    %5 = arith.addf %2, %4 : vector<32x128xf32>
    %cst_5 = arith.constant 0.000000e+00 : f32
    %6 = vector.broadcast %cst_5 : f32 to vector<32x128xf32>
    %7 = arith.maximumf %5, %6 : vector<32x128xf32>
    %c0_6 = arith.constant 0 : index
    %c0_7 = arith.constant 0 : index
    %8 = vector.load %arg4[%c0_6, %c0_7] : memref<32x32xbf16, #tpu.memory_space<vmem>>, vector<32x32xbf16>
    %9 = arith.truncf %7 : vector<32x128xf32> to vector<32x128xbf16>
    %cst_8 = arith.constant dense<0.000000e+00> : vector<32x128xf32>
    %10 = tpu.matmul %8, %9, %cst_8 {dimension_numbers = #tpu.dot_dimension_numbers<[1], [0], [0], [1], [0, 0, 1, 1], [], []>} : vector<32x32xbf16>, vector<32x128xbf16>, vector<32x128xf32> -> vector<32x128xf32>
    %c0_9 = arith.constant 0 : index
    %c0_10 = arith.constant 0 : index
    %11 = vector.load %arg5[%c0_9, %c0_10] : memref<32x1xf32, #tpu.memory_space<vmem>>, vector<32x1xf32>
    %12 = vector.broadcast %11 : vector<32x1xf32> to vector<32x128xf32>
    %13 = arith.addf %10, %12 : vector<32x128xf32>
    %cst_11 = arith.constant 0.000000e+00 : f32
    %14 = vector.broadcast %cst_11 : f32 to vector<32x128xf32>
    %15 = arith.maximumf %13, %14 : vector<32x128xf32>
    %c0_12 = arith.constant 0 : index
    %c0_13 = arith.constant 0 : index
    %16 = vector.load %arg6[%c0_12, %c0_13] : memref<4x32xbf16, #tpu.memory_space<vmem>>, vector<4x32xbf16>
    %17 = arith.truncf %15 : vector<32x128xf32> to vector<32x128xbf16>
    %cst_14 = arith.constant dense<0.000000e+00> : vector<4x128xf32>
    %18 = tpu.matmul %16, %17, %cst_14 {dimension_numbers = #tpu.dot_dimension_numbers<[1], [0], [0], [1], [0, 0, 1, 1], [], []>} : vector<4x32xbf16>, vector<32x128xbf16>, vector<4x128xf32> -> vector<4x128xf32>
    %c0_15 = arith.constant 0 : index
    %c0_16 = arith.constant 0 : index
    %19 = vector.load %arg7[%c0_15, %c0_16] : memref<4x1xf32, #tpu.memory_space<vmem>>, vector<4x1xf32>
    %20 = vector.broadcast %19 : vector<4x1xf32> to vector<4x128xf32>
    %21 = arith.addf %18, %20 : vector<4x128xf32>
    %22 = arith.truncf %21 : vector<4x128xf32> to vector<4x128xbf16>
    %c0_17 = arith.constant 0 : index
    %c0_18 = arith.constant 0 : index
    %23 = vector.load %arg8[%c0_17, %c0_18] : memref<4x128xbf16, #tpu.memory_space<vmem>>, vector<4x128xbf16>
    tpu.vector_store %arg8[%c0_17, %c0_18], %22 {strides = array<i32>} : memref<4x128xbf16, #tpu.memory_space<vmem>>, vector<4x128xbf16>,
    return
  }
  func.func @transform_0(%arg0: i32) -> (i32, i32) {
    %c0_i32 = arith.constant 0 : i32
    %c0_i32_0 = arith.constant 0 : i32
    return %c0_i32, %arg0 : i32, i32
  }
  func.func @transform_1(%arg0: i32) -> (i32, i32) {
    %c0_i32 = arith.constant 0 : i32
    %c0_i32_0 = arith.constant 0 : i32
    %c0_i32_1 = arith.constant 0 : i32
    return %c0_i32, %c0_i32_0 : i32, i32
  }
  func.func @transform_2(%arg0: i32) -> (i32, i32) {
    %c0_i32 = arith.constant 0 : i32
    %c0_i32_0 = arith.constant 0 : i32
    %c0_i32_1 = arith.constant 0 : i32
    return %c0_i32, %c0_i32_0 : i32, i32
  }
  func.func @transform_3(%arg0: i32) -> (i32, i32) {
    %c0_i32 = arith.constant 0 : i32
    %c0_i32_0 = arith.constant 0 : i32
    %c0_i32_1 = arith.constant 0 : i32
    return %c0_i32, %c0_i32_0 : i32, i32
  }
  func.func @transform_4(%arg0: i32) -> (i32, i32) {
    %c0_i32 = arith.constant 0 : i32
    %c0_i32_0 = arith.constant 0 : i32
    %c0_i32_1 = arith.constant 0 : i32
    return %c0_i32, %c0_i32_0 : i32, i32
  }
  func.func @transform_5(%arg0: i32) -> (i32, i32) {
    %c0_i32 = arith.constant 0 : i32
    %c0_i32_0 = arith.constant 0 : i32
    %c0_i32_1 = arith.constant 0 : i32
    return %c0_i32, %c0_i32_0 : i32, i32
  }
  func.func @transform_6(%arg0: i32) -> (i32, i32) {
    %c0_i32 = arith.constant 0 : i32
    %c0_i32_0 = arith.constant 0 : i32
    %c0_i32_1 = arith.constant 0 : i32
    return %c0_i32, %c0_i32_0 : i32, i32
  }
  func.func @transform_7(%arg0: i32) -> (i32, i32) {
    %c0_i32 = arith.constant 0 : i32
    %c0_i32_0 = arith.constant 0 : i32
    return %c0_i32, %arg0 : i32, i32
  }
}

</mosaic_0001>

<bundles_post_ra>
// kernel: performance_predictor.1
= control target key start
LH: loop header
LB: loop body
LE: loop exit
PB: predicated region body
PF: predicated region fallthrough
CT: control target
= control target key end

     0   :  { %vm73_vm0 = vcmask 1043456   ;;  %vm66_vm1 = vcmask 64512   ;;  %v339_v1 = vmov 0   ;;  %vm170_vm2 = vcmask 261120   ;;  %s435_s0 = inlined_call_operand.vmem [shape: bf16[8,128], index: 0, kind: input, shape index: {}]   ;;  %s436_s1 = inlined_call_operand.vmem [shape: bf16[32,8], index: 1, kind: input, shape index: {}]   ;;  %s437_s2 = inlined_call_operand.vmem [shape: f32[32,1], index: 2, kind: input, shape index: {}]   ;;  %s438_s4 = inlined_call_operand.vmem [shape: f32[32,1], index: 4, kind: input, shape index: {}]   ;;  %s439_s6 = inlined_call_operand.vmem [shape: f32[4,1], index: 6, kind: input, shape index: {}]   ;;  %s440_s3 = inlined_call_operand.vmem [shape: bf16[32,32], index: 3, kind: input, shape index: {}]   ;;  %s441_s5 = inlined_call_operand.vmem [shape: bf16[4,32], index: 5, kind: input, shape index: {}]   ;;  %s442_s7 = inlined_call_operand.vmem [shape: bf16[4,128], index: 7, kind: output, shape index: {}]  }
   0x1   :  { %v27_v0 = vld [vmem:[%s435_s0] sm:$0xf]  ;;  %333 = vset.pattern.permute.xlu0 %v339_v1  ;;  %334 = vset.pattern.permute.xlu1 %v339_v1  ;;  %v336_v4 = vld [vmem:[%s436_s1 + $0x8] sm:$0xff]   ;;  %v34_v6 = vld [vmem:[%s437_s2 + $0x10] sm:$0xff]  ;;  %v340_v34 = vmov 0.0   ;;  %vm341_vm3 = vmmov 0  }
   0x2   :  { %329 = vmatprep.subr.msk.bf16.mxu0 %vm73_vm0, %v27_v0  ;;  %v75_v2 = vsel %vm73_vm0, %v27_v0, 0  ;;  %v335_v3 = vld [vmem:[%s436_s1] sm:$0xff]   ;;  %v33_v7 = vld [vmem:[%s437_s2 + $0x8] sm:$0xff]  ;;  %48 = vperm.xlu1 %334, %v34_v6   ;;  %v35_v8 = vld [vmem:[%s437_s2 + $0x18] sm:$0xff] }
   0x3   :  { %308 = vmatpush3.bf16.msra.mxu0 %v75_v2  ;;  %v32_v5 = vld [vmem:[%s437_s2] sm:$0xff]  ;;  %309 = vmatprep.mubr.msk.bf16.mxu0 %vm66_vm1, %v335_v3  ;;  %v137_v10 = vld [vmem:[%s438_s4 + $0x8] sm:$0xff]  ;;  %v138_v11 = vld [vmem:[%s438_s4 + $0x10] sm:$0xff] }
   0x4   :  { %38 = vperm.xlu0 %333, %v32_v5   ;;  %v136_v9 = vld [vmem:[%s438_s4] sm:$0xff]  ;;  %v139_v12 = vld [vmem:[%s438_s4 + $0x18] sm:$0xff]  ;;  %v338_v33 = vld [vmem:[%s440_s3 + $0x8] sm:$0xff]   ;;  %321 = vmatprep.subr.bf16.mxu0 %v340_v34 }
   0x5   :  { %v233_v13 = vld [vmem:[%s439_s6] sm:$0xf] }
   0x6   :  { %310 = vmatmul.mubr.msk.bf16.vlgmr.msra.gmra.mrb[0].mxu0 %vm66_vm1, %v336_v4  ;;  %53 = vperm.xlu1 %334, %v35_v8   ;;  %v337_v14 = vld [vmem:[%s440_s3] sm:$0xff]  }
   0x7   :  { %317 = vmatprep.mubr.msk.bf16.mxu1 %vm170_vm2, %v337_v14  ;;  %325 = vmatprep.mubr.msk.bf16.mxu0 %vm341_vm3, %v340_v34  ;;  %v230_v53 = vld [vmem:[%s441_s5] sm:$0x3] }
   0x8   :  { %43 = vperm.xlu0 %333, %v33_v7  }
   0xa   :  { %147 = vperm.xlu1 %334, %v137_v10  }
   0xc   :  { %142 = vperm.xlu0 %333, %v136_v9  }
   0xe   :  { %157 = vperm.xlu1 %334, %v139_v12  }
  0x10   :  { %152 = vperm.xlu0 %333, %v138_v11  }
  0x14   :  { %236 = vperm.xlu0 %333, %v233_v13  }
  0x81   :  { %v49_v15 = vpop.permute.xlu1 %48 }
  0x83   :  { %v39_v16 = vpop.permute.xlu0 %38 }
  0x85   :  { %v54_v20 = vpop.permute.xlu1 %53 }
  0x87   :  { %v44_v23 = vpop.permute.xlu0 %43 }
  0x89   :  { %v148_v36 = vpop.permute.xlu1 %147 }
  0x8b   :  { %v143_v35 = vpop.permute.xlu0 %142 }
  0x8d   :  { %v158_v41 = vpop.permute.xlu1 %157 }
  0x8f   :  { %v153_v37 = vpop.permute.xlu0 %152 }
  0x93   :  { %v237_v54 = vpop.permute.xlu0 %236 }
  0xd9   :  { %v311_v17 = vpop.f32.mrb[0].mxu0 }
  0xda   :  { %v120_v18 = vadd.f32 %v311_v17, %v49_v15  ;;  %v111_v19 = vpop.f32.mrb[1].mxu0 }
  0xdb   :  { %v112_v21 = vadd.f32 %v111_v19, %v39_v16  ;;  %v312_v22 = vpop.f32.mrb[2].mxu0 }
  0xdc   :  { %v123_v24 = vadd.f32 %v312_v22, %v54_v20  ;;  %v114_v25 = vpop.f32.mrb[3].mxu0  ;;  %v128_v27 = vmax.f32 %v120_v18, 0.0 }
  0xdd   :  { %v115_v26 = vadd.f32 %v114_v25, %v44_v23  ;;  %v126_v29 = vmax.f32 %v112_v21, 0.0 }
  0xde   :  { %v129_v28 = vmax.f32 %v123_v24, 0.0 }
  0xdf   :  { %v127_v30 = vmax.f32 %v115_v26, 0.0 }
  0xe0   :  { %v135_v31 = vpack.c.bf16 %v129_v28, %v128_v27 }
  0xe1   :  { %v134_v32 = vpack.c.bf16 %v127_v30, %v126_v29 }
  0xe3   :  { %313 = vmatprep.subr.bf16.mxu1 %v134_v32 }
  0xe4   :  { %314 = vmatpush3.bf16.msra.mxu1 %v134_v32 }
  0xe5   :  { %315 = vmatprep.subr.bf16.mxu1 %v135_v31 }
  0xe8   :  { %316 = vmatpush3.bf16.msra.mxu1 %v135_v31 }
  0xeb   :  { %318 = vmatmul.mubr.msk.bf16.vlgmr.msra.gmra.mrb[0].mxu1 %vm170_vm2, %v338_v33 }
 0x1be   :  { %v319_v38 = vpop.f32.mrb[0].mxu1 }
 0x1bf   :  { %v220_v39 = vadd.f32 %v319_v38, %v153_v37  ;;  %v211_v40 = vpop.f32.mrb[1].mxu1 }
 0x1c0   :  { %v212_v42 = vadd.f32 %v211_v40, %v143_v35  ;;  %v320_v43 = vpop.f32.mrb[2].mxu1 }
 0x1c1   :  { %v223_v44 = vadd.f32 %v320_v43, %v158_v41  ;;  %v214_v45 = vpop.f32.mrb[3].mxu1  ;;  %v228_v47 = vmax.f32 %v220_v39, 0.0 }
 0x1c2   :  { %v215_v46 = vadd.f32 %v214_v45, %v148_v36  ;;  %v226_v49 = vmax.f32 %v212_v42, 0.0 }
 0x1c3   :  { %v229_v48 = vmax.f32 %v223_v44, 0.0 }
 0x1c4   :  { %v227_v50 = vmax.f32 %v215_v46, 0.0 }
 0x1c5   :  { %v232_v51 = vpack.c.bf16 %v229_v48, %v228_v47 }
 0x1c6   :  { %v231_v52 = vpack.c.bf16 %v227_v50, %v226_v49 }
 0x1c8   :  { %322 = vmatpush3.bf16.msra.mxu0 %v231_v52 }
 0x1c9   :  { %323 = vmatprep.subr.bf16.mxu0 %v340_v34 }
 0x1cc   :  { %324 = vmatpush3.bf16.msra.mxu0 %v232_v51 }
 0x1cf   :  { %326 = vmatmul.mubr.msk.bf16.vlgmr.msra.gmra.mrb[4].mxu0 %vm170_vm2, %v230_v53 }
 0x2a2   :  { %v276_v55 = vpop.f32.mrb[4].mxu0 }
 0x2a3   :  { %v277_v56 = vadd.f32 %v276_v55, %v237_v54  ;;  %v327_v57 = vpop.f32.mrb[5].mxu0 }
 0x2a4   :  { %v279_v58 = vpop.f32.mrb[6].mxu0 }
 0x2a5   :  { %v282_v59 = vpack.c.bf16 %v277_v56, %v277_v56  ;;  %v328_v60 = vpop.f32.mrb[7].mxu0 }
 0x2a7   :  { %283 = vst [vmem:[%s442_s7] sm:$0x3] %v282_v59 }

</bundles_post_ra>
